<compile_context>
chip_gen: v6e
topology: v6e:2x2x1
jax: 0.10.0
libtpu: 0.0.40
codegen_flags: <defaults>
</compile_context>

<pallas_src>
import functools
import math

import jax
import jax.numpy as jnp
from jax.experimental import pallas as pl
from jax.experimental.pallas import tpu as pltpu


# ----------------------------------------------------------------------------
# Hardware detection helpers (generation-specific tuning, per review).
# ----------------------------------------------------------------------------
def _device_kind():
    try:
        return jax.devices()[0].device_kind.lower()
    except Exception:
        return ""


def _is_v5(kind):
    return "v5" in kind


def _is_v7(kind):
    return ("v7" in kind) or ("7x" in kind)


def _has_bf16_eup(kind):
    # v6e / v7x have bf16 VPU+EUP; v5e does not.
    return ("v6" in kind) or _is_v7(kind)


def _vmem_budget_bytes(kind):
    """~75% of physical VMEM: headroom for compiler scratch / pipeline bufs."""
    phys = None
    try:
        phys = getattr(pltpu.get_tpu_info(), "vmem_capacity_bytes", None)
    except Exception:
        phys = None
    if not phys:
        phys = (64 << 20) if _is_v7(kind) else (128 << 20)
    return int(phys) * 3 // 4


def _round_up(n, m):
    return ((n + m - 1) // m) * m


def _tile_and_pad(length, block):
    """Legal tile (multiple of 8, or the full length) + padded length."""
    if length <= block:
        return length, length            # full-dim block: always legal
    t = max(8, (block // 8) * 8)         # sublane-aligned tile
    return t, _round_up(length, t)


def _resident_spec(shape, index_map):
    """Constant-index weight block: single-buffered (review item)."""
    try:
        return pl.BlockSpec(shape, index_map, pipeline_mode=pl.Buffered(1))
    except (AttributeError, TypeError):   # older jax without pipeline_mode
        return pl.BlockSpec(shape, index_map)


# ----------------------------------------------------------------------------
# Prologue kernel: per-head K/V projection, computed ONCE (not per q tile).
# ----------------------------------------------------------------------------
def _kv_proj_kernel(y_ref, wk_ref, bk_ref, wv_ref, bv_ref, k_ref, v_ref,
                    *, n_head):
    f32 = jnp.float32
    yb = y_ref[0].astype(jnp.bfloat16)                       # (TK, D)
    for h in range(n_head):                                   # static, one-shot
        kh = jnp.dot(yb, wk_ref[h], preferred_element_type=f32) + bk_ref[h]
        vh = jnp.dot(yb, wv_ref[h], preferred_element_type=f32) + bv_ref[h]
        k_ref[0, h] = kh.astype(k_ref.dtype)
        v_ref[0, h] = vh.astype(v_ref.dtype)


def _kv_project(Y, wk3, bk3, wv3, bv3, *, n_head, d_k, d_v, tile):
    B, Lk, D = Y.shape
    nk = Lk // tile
    kernel = functools.partial(_kv_proj_kernel, n_head=n_head)
    return pl.pallas_call(
        kernel,
        out_shape=(jax.ShapeDtypeStruct((B, n_head, Lk, d_k), jnp.bfloat16),
                   jax.ShapeDtypeStruct((B, n_head, Lk, d_v), jnp.bfloat16)),
        grid_spec=pltpu.PrefetchScalarGridSpec(
            num_scalar_prefetch=0,
            grid=(B, nk),
            in_specs=[
                pl.BlockSpec((1, tile, D), lambda b, i: (b, i, 0)),
                _resident_spec(wk3.shape, lambda b, i: (0, 0, 0)),
                _resident_spec(bk3.shape, lambda b, i: (0, 0, 0)),
                _resident_spec(wv3.shape, lambda b, i: (0, 0, 0)),
                _resident_spec(bv3.shape, lambda b, i: (0, 0, 0)),
            ],
            out_specs=[
                pl.BlockSpec((1, n_head, tile, d_k), lambda b, i: (b, 0, i, 0)),
                pl.BlockSpec((1, n_head, tile, d_v), lambda b, i: (b, 0, i, 0)),
            ]),
        compiler_params=pltpu.CompilerParams(
            dimension_semantics=("parallel", "parallel")),
    )(Y, wk3, bk3, wv3, bv3)


# ----------------------------------------------------------------------------
# Main kernel: flash attention (one head / one KV tile per grid step)
#              + Wo accumulation + LayerNorm + FFN, fused.
# ----------------------------------------------------------------------------
def attblock_kernel(x_ref, k_ref, v_ref,
                    wq_ref, bq_ref, wo_ref, bo_ref,
                    gamma_ref, beta_ref, w1_ref, b1_ref, w2_ref, b2_ref,
                    out_ref,
                    q_sc, m_sc, l_sc, acc_sc, enc_sc,
                    *, scale, kv_len, probs_bf16):
    f32 = jnp.float32
    bf16 = jnp.bfloat16
    hi = pl.program_id(2)
    ki = pl.program_id(3)
    nh = pl.num_programs(2)
    nk = pl.num_programs(3)

    # ---- once per (b, qi) output tile: start the MHA residual accumulator --
    @pl.when((hi == 0) & (ki == 0))
    def _init_block():
        enc_sc[...] = x_ref[0] + bo_ref[...]          # X + bo; heads added below

    # ---- once per (b, qi, head): project + scale Q, reset online softmax ---
    @pl.when(ki == 0)
    def _init_head():
        xb = x_ref[0].astype(bf16)
        qh = jnp.dot(xb, wq_ref[0], preferred_element_type=f32) + bq_ref[0]
        q_sc[...] = (qh * scale).astype(bf16)          # fold 1/sqrt(d_k) once
        m_sc[...] = jnp.full_like(m_sc, -jnp.inf)
        l_sc[...] = jnp.zeros_like(l_sc)
        acc_sc[...] = jnp.zeros_like(acc_sc)

    # ---- hot path: one KV tile of one head (flash online-softmax update) ---
    kh = k_ref[0, 0]                                   # (TK, d_k) bf16
    vh = v_ref[0, 0]                                   # (TK, d_v) bf16
    s = jax.lax.dot_general(q_sc[...], kh, (((1,), (1,)), ((), ())),
                            preferred_element_type=f32)          # (TQ, TK)
    if kv_len is not None:
        # Tail columns come from zero-padded Y: exclude them from the softmax.
        # TODO(synk): a user-supplied attention mask (mask=None in this module's
        #             exercised path) would be wired through this same where().
        col = ki * s.shape[1] + jax.lax.broadcasted_iota(jnp.int32, s.shape, 1)
        s = jnp.where(col < kv_len, s, -1e30)
    m_prev = m_sc[...]
    m_new = jnp.maximum(m_prev, jnp.max(s, axis=-1, keepdims=True))
    alpha = jnp.exp(m_prev - m_new)
    if probs_bf16:
        # v6e/v7x: bf16 EUP/VPU -> exp in bf16 halves EUP work + p footprint.
        p = jnp.exp((s - m_new).astype(bf16))
        p_sum = jnp.sum(p.astype(f32), axis=-1, keepdims=True)
        pv = jnp.dot(p, vh, preferred_element_type=f32)
    else:
        p = jnp.exp(s - m_new)
        p_sum = jnp.sum(p, axis=-1, keepdims=True)
        pv = jnp.dot(p.astype(bf16), vh, preferred_element_type=f32)
    l_sc[...] = alpha * l_sc[...] + p_sum
    acc_sc[...] = alpha * acc_sc[...] + pv
    m_sc[...] = m_new

    # ---- last KV tile of this head: fold O_h @ Wo_h into the residual sum --
    @pl.when(ki == nk - 1)
    def _end_head():
        o_h = acc_sc[...] / l_sc[...]                  # exact recip (cold path)
        enc_sc[...] = enc_sc[...] + jnp.dot(o_h.astype(bf16), wo_ref[0],
                                            preferred_element_type=f32)

    # ---- last head & last KV tile: LayerNorm + FFN + residual, store -------
    @pl.when((hi == nh - 1) & (ki == nk - 1))
    def _finalize():
        enc = enc_sc[...]                              # (TQ, D) f32
        mu = jnp.mean(enc, axis=-1, keepdims=True)
        var = jnp.mean(jnp.square(enc - mu), axis=-1, keepdims=True)
        hn = (enc - mu) * jax.lax.rsqrt(var + 1e-6) * gamma_ref[...] + beta_ref[...]
        f = jnp.maximum(
            jnp.dot(hn.astype(bf16), w1_ref[...],
                    preferred_element_type=f32) + b1_ref[...], 0.0)
        f = jnp.dot(f.astype(bf16), w2_ref[...],
                    preferred_element_type=f32) + b2_ref[...]
        out_ref[0] = (f + hn).astype(out_ref.dtype)


# ----------------------------------------------------------------------------
# Wrapper.
# ----------------------------------------------------------------------------
def _prep_params(params, *, n_head, d_k, d_v):
    """One-time layout plumbing: split Q/K/V/O weights per head, bf16 cast."""
    (wq, bq, wk, bk, wv, bv, wo, bo, gamma, beta, w1, b1, w2, b2) = params
    D = wq.shape[0]
    bf16 = jnp.bfloat16
    wq3 = wq.reshape(D, n_head, d_k).transpose(1, 0, 2).astype(bf16)  # (H,D,dk)
    wk3 = wk.reshape(D, n_head, d_k).transpose(1, 0, 2).astype(bf16)
    wv3 = wv.reshape(D, n_head, d_v).transpose(1, 0, 2).astype(bf16)
    wo3 = wo.reshape(n_head, d_v, D).astype(bf16)                     # (H,dv,D)
    bq3 = bq.reshape(n_head, 1, d_k)
    bk3 = bk.reshape(n_head, 1, d_k)
    bv3 = bv.reshape(n_head, 1, d_v)
    return (wq3, bq3, wk3, bk3, wv3, bv3, wo3, bo, gamma, beta,
            w1.astype(bf16), b1, w2.astype(bf16), b2)


def attblock_forward(X, Y, params, *, n_head, d_k, d_v,
                     block_q=128, block_k=None):
    """params order: (wq, bq, wk, bk, wv, bv, wo, bo, gamma, beta, w1, b1,
    w2, b2); weights (in, out), biases / LN params (1, dim), all f32."""
    B, Lq, D = X.shape
    _, Lk, _ = Y.shape

    kind = _device_kind()
    if block_k is None:
        # v5e MXU is 128 wide -> 256 buys nothing and doubles live s/p vregs.
        block_k = 128 if _is_v5(kind) else 256
    probs_bf16 = _has_bf16_eup(kind)

    (wq3, bq3, wk3, bk3, wv3, bv3, wo3, bo, gamma, beta,
     w1b, b1, w2b, b2) = _prep_params(params, n_head=n_head, d_k=d_k, d_v=d_v)

    # ---- legal tiles + padding (never shrink to an arbitrary divisor) ------
    TQ, Lq_pad = _tile_and_pad(Lq, block_q)
    TK, Lk_pad = _tile_and_pad(Lk, block_k)
    # v7x megacore: keep the parallel grid extent (B * nq) >= 2 when possible.
    if _is_v7(kind) and B * (Lq_pad // TQ) < 2 and Lq > 8:
        TQ = _round_up((Lq + 1) // 2, 8)
        Lq_pad = _round_up(Lq, TQ)

    X_in = X if Lq_pad == Lq else jnp.pad(X, ((0, 0), (0, Lq_pad - Lq), (0, 0)))
    if Lk_pad == Lk:
        Y_in, kv_len = Y, None
    else:
        Y_in, kv_len = jnp.pad(Y, ((0, 0), (0, Lk_pad - Lk), (0, 0))), Lk

    nq = Lq_pad // TQ
    nk = Lk_pad // TK

    # ---- prologue: per-head K/V projection, once per Y (not per q tile) ----
    Kp, Vp = _kv_project(Y_in, wk3, bk3, wv3, bv3,
                         n_head=n_head, d_k=d_k, d_v=d_v, tile=TK)

    kernel = functools.partial(attblock_kernel, scale=1.0 / math.sqrt(d_k),
                               kv_len=kv_len, probs_bf16=probs_bf16)

    in_specs = [
        pl.BlockSpec((1, TQ, D), lambda b, qi, h, ki: (b, qi, 0)),          # X
        pl.BlockSpec((1, 1, TK, d_k), lambda b, qi, h, ki: (b, h, ki, 0)),  # K
        pl.BlockSpec((1, 1, TK, d_v), lambda b, qi, h, ki: (b, h, ki, 0)),  # V
        pl.BlockSpec((1, D, d_k), lambda b, qi, h, ki: (h, 0, 0)),          # wq_h
        pl.BlockSpec((1, 1, d_k), lambda b, qi, h, ki: (h, 0, 0)),          # bq_h
        pl.BlockSpec((1, d_v, D), lambda b, qi, h, ki: (h, 0, 0)),          # wo_h
        _resident_spec((1, D), lambda b, qi, h, ki: (0, 0)),                # bo
        _resident_spec((1, D), lambda b, qi, h, ki: (0, 0)),                # gamma
        _resident_spec((1, D), lambda b, qi, h, ki: (0, 0)),                # beta
        _resident_spec((D, D), lambda b, qi, h, ki: (0, 0)),                # w1
        _resident_spec((1, D), lambda b, qi, h, ki: (0, 0)),                # b1
        _resident_spec((D, D), lambda b, qi, h, ki: (0, 0)),                # w2
        _resident_spec((1, D), lambda b, qi, h, ki: (0, 0)),                # b2
    ]

    # ---- VMEM budget from the tile footprint (not the chip ceiling) --------
    per_head_w = D * d_k * 2 + d_k * 4 + d_v * D * 2
    const_w = 5 * D * 4 + 2 * D * D * 2
    act = 2 * TQ * D * 4 + 2 * TK * (d_k + d_v) * 2 + 2 * TQ * D * 4
    scratch = TQ * (2 * d_k + 8 + 4 * d_v + 4 * D)
    interm = 3 * TQ * TK * 4
    est = act + 2 * per_head_w + const_w + scratch + interm
    vmem_limit = int(min(_vmem_budget_bytes(kind), max(2 * est, 32 * 2**20)))

    param_bytes = sum(int(p.size) * p.dtype.itemsize for p in
                      (wq3, bq3, wo3, bo, gamma, beta, w1b, b1, w2b, b2))
    flops = 2 * B * (Lq_pad * D * n_head * d_k
                     + n_head * Lq_pad * Lk_pad * (d_k + d_v)
                     + Lq_pad * n_head * d_v * D
                     + 2 * Lq_pad * D * D)
    cost = pl.CostEstimate(
        flops=int(flops),
        transcendentals=int(B * n_head * Lq_pad * Lk_pad + B * Lq_pad),
        bytes_accessed=int(4 * X_in.size + 2 * (Kp.size + Vp.size) * nq
                           + 4 * B * Lq_pad * D + param_bytes))

    out = pl.pallas_call(
        kernel,
        out_shape=jax.ShapeDtypeStruct((B, Lq_pad, D), X.dtype),
        grid_spec=pltpu.PrefetchScalarGridSpec(
            num_scalar_prefetch=0,
            grid=(B, nq, n_head, nk),
            in_specs=in_specs,
            out_specs=pl.BlockSpec((1, TQ, D), lambda b, qi, h, ki: (b, qi, 0)),
            scratch_shapes=[
                pltpu.VMEM((TQ, d_k), jnp.bfloat16),  # scaled Q (current head)
                pltpu.VMEM((TQ, 1), jnp.float32),     # running max m
                pltpu.VMEM((TQ, 1), jnp.float32),     # running sum l
                pltpu.VMEM((TQ, d_v), jnp.float32),   # running PV accumulator
                pltpu.VMEM((TQ, D), jnp.float32),     # enc = X + bo + sum_h O_h Wo_h
            ]),
        compiler_params=pltpu.CompilerParams(
            dimension_semantics=("parallel", "parallel", "arbitrary", "arbitrary"),
            vmem_limit_bytes=vmem_limit),
        cost_estimate=cost,
    )(X_in, Kp, Vp, wq3, bq3, wo3, bo, gamma, beta, w1b, b1, w2b, b2)

    return out if Lq_pad == Lq else out[:, :Lq, :]


# ----------------------------------------------------------------------------
# Pure-JAX reference + parameter construction (for validation).
# ----------------------------------------------------------------------------
def attblock_reference(X, Y, params, *, n_head, d_k, d_v):
    (wq, bq, wk, bk, wv, bv, wo, bo, gamma, beta, w1, b1, w2, b2) = params
    B, Lq, D = X.shape
    Lk = Y.shape[1]
    q = (X @ wq + bq).reshape(B, Lq, n_head, d_k).transpose(0, 2, 1, 3)
    k = (Y @ wk + bk).reshape(B, Lk, n_head, d_k).transpose(0, 2, 1, 3)
    v = (Y @ wv + bv).reshape(B, Lk, n_head, d_v).transpose(0, 2, 1, 3)
    s = jnp.einsum("bhqd,bhkd->bhqk", q, k) / math.sqrt(d_k)
    attn = jax.nn.softmax(s, axis=-1)
    o = jnp.einsum("bhqk,bhkd->bhqd", attn, v).transpose(0, 2, 1, 3).reshape(B, Lq, -1)
    enc = o @ wo + bo + X
    mu = jnp.mean(enc, axis=-1, keepdims=True)
    var = jnp.mean(jnp.square(enc - mu), axis=-1, keepdims=True)
    hn = (enc - mu) * jax.lax.rsqrt(var + 1e-6) * gamma + beta
    f = jnp.maximum(hn @ w1 + b1, 0.0) @ w2 + b2
    return f + hn


def make_params(key, d_model, n_head, d_k, d_v):
    ks = jax.random.split(key, 6)
    sc = 0.02
    wq = sc * jax.random.normal(ks[0], (d_model, n_head * d_k), jnp.float32)
    wk = sc * jax.random.normal(ks[1], (d_model, n_head * d_k), jnp.float32)
    wv = sc * jax.random.normal(ks[2], (d_model, n_head * d_v), jnp.float32)
    wo = sc * jax.random.normal(ks[3], (n_head * d_v, d_model), jnp.float32)
    w1 = sc * jax.random.normal(ks[4], (d_model, d_model), jnp.float32)
    w2 = sc * jax.random.normal(ks[5], (d_model, d_model), jnp.float32)
    bq = jnp.zeros((1, n_head * d_k), jnp.float32)
    bk = jnp.zeros((1, n_head * d_k), jnp.float32)
    bv = jnp.zeros((1, n_head * d_v), jnp.float32)
    bo = jnp.zeros((1, d_model), jnp.float32)
    b1 = jnp.full((1, d_model), 0.01, jnp.float32)
    b2 = jnp.full((1, d_model), -0.01, jnp.float32)
    gamma = jnp.ones((1, d_model), jnp.float32)
    beta = jnp.zeros((1, d_model), jnp.float32)
    return (wq, bq, wk, bk, wv, bv, wo, bo, gamma, beta, w1, b1, w2, b2)


if __name__ == "__main__":
    d_model, n_head, d_k, d_v = 32, 4, 8, 8
    key = jax.random.PRNGKey(0)
    kx, ky, kp = jax.random.split(key, 3)
    params = make_params(kp, d_model, n_head, d_k, d_v)

    # --- test 1: toy config (single tile per axis) --------------------------
    B, Lq, Lk = 2, 8, 8
    X = jax.random.normal(kx, (B, Lq, d_model), jnp.float32)
    Y = jax.random.normal(ky, (B, Lk, d_model), jnp.float32)
    out = attblock_forward(X, Y, params, n_head=n_head, d_k=d_k, d_v=d_v)
    out = jax.block_until_ready(out)
    ref = attblock_reference(X, Y, params, n_head=n_head, d_k=d_k, d_v=d_v)
    assert out.shape == (B, Lq, d_model)
    # bf16 MXU inputs (f32 accumulation) vs. f32 reference -> relaxed tol.
    assert jnp.allclose(out, ref, atol=2e-2, rtol=2e-2)

    # --- test 2: multi-tile grid (nq=2, nk=3) + KV padding/mask path --------
    B2, Lq2, Lk2 = 1, 16, 20       # Lk2 is not a tile multiple -> padded+masked
    X2 = jax.random.normal(jax.random.PRNGKey(1), (B2, Lq2, d_model), jnp.float32)
    Y2 = jax.random.normal(jax.random.PRNGKey(2), (B2, Lk2, d_model), jnp.float32)
    out2 = attblock_forward(X2, Y2, params, n_head=n_head, d_k=d_k, d_v=d_v,
                            block_q=8, block_k=8)
    out2 = jax.block_until_ready(out2)
    ref2 = attblock_reference(X2, Y2, params, n_head=n_head, d_k=d_k, d_v=d_v)
    assert out2.shape == (B2, Lq2, d_model)
    assert jnp.allclose(out2, ref2, atol=2e-2, rtol=2e-2)

    print("KERNEL_OK")
</pallas_src>

<mosaic_0001>
module attributes {stable_mosaic.version = 11 : i64} {
  func.func @_kv_proj_kernel(%arg0: i32, %arg1: i32, %arg2: memref<1x8x32xf32, #tpu.memory_space<vmem>>, %arg3: memref<4x32x8xbf16, #tpu.memory_space<vmem>>, %arg4: memref<4x1x8xf32, #tpu.memory_space<vmem>>, %arg5: memref<4x32x8xbf16, #tpu.memory_space<vmem>>, %arg6: memref<4x1x8xf32, #tpu.memory_space<vmem>>, %arg7: memref<1x4x8x8xbf16, #tpu.memory_space<vmem>>, %arg8: memref<1x4x8x8xbf16, #tpu.memory_space<vmem>>) attributes {dimension_semantics = [#tpu.dimension_semantics<parallel>, #tpu.dimension_semantics<parallel>], iteration_bounds = array<i64: 2, 1>, scalar_prefetch = 0 : i64, scratch_operands = 0 : i64, tpu.core_type = #tpu.core_type<tc>, window_params = [{transform_indices = @transform_0, window_bounds = array<i64: 1, 8, 32>}, {pipeline_mode = #tpu.pipeline_mode<synchronous>, transform_indices = @transform_1, window_bounds = array<i64: 4, 32, 8>}, {pipeline_mode = #tpu.pipeline_mode<synchronous>, transform_indices = @transform_2, window_bounds = array<i64: 4, 1, 8>}, {pipeline_mode = #tpu.pipeline_mode<synchronous>, transform_indices = @transform_3, window_bounds = array<i64: 4, 32, 8>}, {pipeline_mode = #tpu.pipeline_mode<synchronous>, transform_indices = @transform_4, window_bounds = array<i64: 4, 1, 8>}, {transform_indices = @transform_5, window_bounds = array<i64: 1, 4, 8, 8>}, {transform_indices = @transform_6, window_bounds = array<i64: 1, 4, 8, 8>}]} {
    %c0 = arith.constant 0 : index
    %c0_0 = arith.constant 0 : index
    %c0_1 = arith.constant 0 : index
    %0 = vector.load %arg2[%c0, %c0_0, %c0_1] : memref<1x8x32xf32, #tpu.memory_space<vmem>>, vector<1x8x32xf32>
    %1 = vector.shape_cast %0 : vector<1x8x32xf32> to vector<8x32xf32>
    %2 = arith.truncf %1 : vector<8x32xf32> to vector<8x32xbf16>
    %c0_2 = arith.constant 0 : index
    %c0_3 = arith.constant 0 : index
    %c0_4 = arith.constant 0 : index
    %3 = vector.load %arg3[%c0_2, %c0_3, %c0_4] : memref<4x32x8xbf16, #tpu.memory_space<vmem>>, vector<1x32x8xbf16>
    %4 = vector.shape_cast %3 : vector<1x32x8xbf16> to vector<32x8xbf16>
    %cst = arith.constant dense<0.000000e+00> : vector<8x8xf32>
    %5 = tpu.matmul %2, %4, %cst {dimension_numbers = #tpu.dot_dimension_numbers<[1], [0], [0], [1], [0, 0, 1, 1], [], []>} : vector<8x32xbf16>, vector<32x8xbf16>, vector<8x8xf32> -> vector<8x8xf32>
    %c0_5 = arith.constant 0 : index
    %c0_6 = arith.constant 0 : index
    %c0_7 = arith.constant 0 : index
    %6 = vector.load %arg4[%c0_5, %c0_6, %c0_7] : memref<4x1x8xf32, #tpu.memory_space<vmem>>, vector<1x1x8xf32>
    %7 = vector.shape_cast %6 : vector<1x1x8xf32> to vector<1x8xf32>
    %8 = vector.broadcast %7 : vector<1x8xf32> to vector<8x8xf32>
    %9 = arith.addf %5, %8 : vector<8x8xf32>
    %c0_8 = arith.constant 0 : index
    %c0_9 = arith.constant 0 : index
    %c0_10 = arith.constant 0 : index
    %10 = vector.load %arg5[%c0_8, %c0_9, %c0_10] : memref<4x32x8xbf16, #tpu.memory_space<vmem>>, vector<1x32x8xbf16>
    %11 = vector.shape_cast %10 : vector<1x32x8xbf16> to vector<32x8xbf16>
    %cst_11 = arith.constant dense<0.000000e+00> : vector<8x8xf32>
    %12 = tpu.matmul %2, %11, %cst_11 {dimension_numbers = #tpu.dot_dimension_numbers<[1], [0], [0], [1], [0, 0, 1, 1], [], []>} : vector<8x32xbf16>, vector<32x8xbf16>, vector<8x8xf32> -> vector<8x8xf32>
    %c0_12 = arith.constant 0 : index
    %c0_13 = arith.constant 0 : index
    %c0_14 = arith.constant 0 : index
    %13 = vector.load %arg6[%c0_12, %c0_13, %c0_14] : memref<4x1x8xf32, #tpu.memory_space<vmem>>, vector<1x1x8xf32>
    %14 = vector.shape_cast %13 : vector<1x1x8xf32> to vector<1x8xf32>
    %15 = vector.broadcast %14 : vector<1x8xf32> to vector<8x8xf32>
    %16 = arith.addf %12, %15 : vector<8x8xf32>
    %17 = arith.truncf %9 : vector<8x8xf32> to vector<8x8xbf16>
    %c0_15 = arith.constant 0 : index
    %c0_16 = arith.constant 0 : index
    %c0_17 = arith.constant 0 : index
    %c0_18 = arith.constant 0 : index
    %18 = vector.load %arg7[%c0_15, %c0_16, %c0_17, %c0_18] : memref<1x4x8x8xbf16, #tpu.memory_space<vmem>>, vector<1x1x8x8xbf16>
    %19 = vector.shape_cast %18 : vector<1x1x8x8xbf16> to vector<8x8xbf16>
    %20 = vector.shape_cast %17 : vector<8x8xbf16> to vector<1x1x8x8xbf16>
    tpu.vector_store %arg7[%c0_15, %c0_16, %c0_17, %c0_18], %20 {strides = array<i32>} : memref<1x4x8x8xbf16, #tpu.memory_space<vmem>>, vector<1x1x8x8xbf16>,
    %21 = arith.truncf %16 : vector<8x8xf32> to vector<8x8xbf16>
    %c0_19 = arith.constant 0 : index
    %c0_20 = arith.constant 0 : index
    %c0_21 = arith.constant 0 : index
    %c0_22 = arith.constant 0 : index
    %22 = vector.load %arg8[%c0_19, %c0_20, %c0_21, %c0_22] : memref<1x4x8x8xbf16, #tpu.memory_space<vmem>>, vector<1x1x8x8xbf16>
    %23 = vector.shape_cast %22 : vector<1x1x8x8xbf16> to vector<8x8xbf16>
    %24 = vector.shape_cast %21 : vector<8x8xbf16> to vector<1x1x8x8xbf16>
    tpu.vector_store %arg8[%c0_19, %c0_20, %c0_21, %c0_22], %24 {strides = array<i32>} : memref<1x4x8x8xbf16, #tpu.memory_space<vmem>>, vector<1x1x8x8xbf16>,
    %c1 = arith.constant 1 : index
    %c0_23 = arith.constant 0 : index
    %c0_24 = arith.constant 0 : index
    %25 = vector.load %arg3[%c1, %c0_23, %c0_24] : memref<4x32x8xbf16, #tpu.memory_space<vmem>>, vector<1x32x8xbf16>
    %26 = vector.shape_cast %25 : vector<1x32x8xbf16> to vector<32x8xbf16>
    %cst_25 = arith.constant dense<0.000000e+00> : vector<8x8xf32>
    %27 = tpu.matmul %2, %26, %cst_25 {dimension_numbers = #tpu.dot_dimension_numbers<[1], [0], [0], [1], [0, 0, 1, 1], [], []>} : vector<8x32xbf16>, vector<32x8xbf16>, vector<8x8xf32> -> vector<8x8xf32>
    %c1_26 = arith.constant 1 : index
    %c0_27 = arith.constant 0 : index
    %c0_28 = arith.constant 0 : index
    %28 = vector.load %arg4[%c1_26, %c0_27, %c0_28] : memref<4x1x8xf32, #tpu.memory_space<vmem>>, vector<1x1x8xf32>
    %29 = vector.shape_cast %28 : vector<1x1x8xf32> to vector<1x8xf32>
    %30 = vector.broadcast %29 : vector<1x8xf32> to vector<8x8xf32>
    %31 = arith.addf %27, %30 : vector<8x8xf32>
    %c1_29 = arith.constant 1 : index
    %c0_30 = arith.constant 0 : index
    %c0_31 = arith.constant 0 : index
    %32 = vector.load %arg5[%c1_29, %c0_30, %c0_31] : memref<4x32x8xbf16, #tpu.memory_space<vmem>>, vector<1x32x8xbf16>
    %33 = vector.shape_cast %32 : vector<1x32x8xbf16> to vector<32x8xbf16>
    %cst_32 = arith.constant dense<0.000000e+00> : vector<8x8xf32>
    %34 = tpu.matmul %2, %33, %cst_32 {dimension_numbers = #tpu.dot_dimension_numbers<[1], [0], [0], [1], [0, 0, 1, 1], [], []>} : vector<8x32xbf16>, vector<32x8xbf16>, vector<8x8xf32> -> vector<8x8xf32>
    %c1_33 = arith.constant 1 : index
    %c0_34 = arith.constant 0 : index
    %c0_35 = arith.constant 0 : index
    %35 = vector.load %arg6[%c1_33, %c0_34, %c0_35] : memref<4x1x8xf32, #tpu.memory_space<vmem>>, vector<1x1x8xf32>
    %36 = vector.shape_cast %35 : vector<1x1x8xf32> to vector<1x8xf32>
    %37 = vector.broadcast %36 : vector<1x8xf32> to vector<8x8xf32>
    %38 = arith.addf %34, %37 : vector<8x8xf32>
    %39 = arith.truncf %31 : vector<8x8xf32> to vector<8x8xbf16>
    %c0_36 = arith.constant 0 : index
    %c1_37 = arith.constant 1 : index
    %c0_38 = arith.constant 0 : index
    %c0_39 = arith.constant 0 : index
    %40 = vector.load %arg7[%c0_36, %c1_37, %c0_38, %c0_39] : memref<1x4x8x8xbf16, #tpu.memory_space<vmem>>, vector<1x1x8x8xbf16>
    %41 = vector.shape_cast %40 : vector<1x1x8x8xbf16> to vector<8x8xbf16>
    %42 = vector.shape_cast %39 : vector<8x8xbf16> to vector<1x1x8x8xbf16>
    tpu.vector_store %arg7[%c0_36, %c1_37, %c0_38, %c0_39], %42 {strides = array<i32>} : memref<1x4x8x8xbf16, #tpu.memory_space<vmem>>, vector<1x1x8x8xbf16>,
    %43 = arith.truncf %38 : vector<8x8xf32> to vector<8x8xbf16>
    %c0_40 = arith.constant 0 : index
    %c1_41 = arith.constant 1 : index
    %c0_42 = arith.constant 0 : index
    %c0_43 = arith.constant 0 : index
    %44 = vector.load %arg8[%c0_40, %c1_41, %c0_42, %c0_43] : memref<1x4x8x8xbf16, #tpu.memory_space<vmem>>, vector<1x1x8x8xbf16>
    %45 = vector.shape_cast %44 : vector<1x1x8x8xbf16> to vector<8x8xbf16>
    %46 = vector.shape_cast %43 : vector<8x8xbf16> to vector<1x1x8x8xbf16>
    tpu.vector_store %arg8[%c0_40, %c1_41, %c0_42, %c0_43], %46 {strides = array<i32>} : memref<1x4x8x8xbf16, #tpu.memory_space<vmem>>, vector<1x1x8x8xbf16>,
    %c2 = arith.constant 2 : index
    %c0_44 = arith.constant 0 : index
    %c0_45 = arith.constant 0 : index
    %47 = vector.load %arg3[%c2, %c0_44, %c0_45] : memref<4x32x8xbf16, #tpu.memory_space<vmem>>, vector<1x32x8xbf16>
    %48 = vector.shape_cast %47 : vector<1x32x8xbf16> to vector<32x8xbf16>
    %cst_46 = arith.constant dense<0.000000e+00> : vector<8x8xf32>
    %49 = tpu.matmul %2, %48, %cst_46 {dimension_numbers = #tpu.dot_dimension_numbers<[1], [0], [0], [1], [0, 0, 1, 1], [], []>} : vector<8x32xbf16>, vector<32x8xbf16>, vector<8x8xf32> -> vector<8x8xf32>
    %c2_47 = arith.constant 2 : index
    %c0_48 = arith.constant 0 : index
    %c0_49 = arith.constant 0 : index
    %50 = vector.load %arg4[%c2_47, %c0_48, %c0_49] : memref<4x1x8xf32, #tpu.memory_space<vmem>>, vector<1x1x8xf32>
    %51 = vector.shape_cast %50 : vector<1x1x8xf32> to vector<1x8xf32>
    %52 = vector.broadcast %51 : vector<1x8xf32> to vector<8x8xf32>
    %53 = arith.addf %49, %52 : vector<8x8xf32>
    %c2_50 = arith.constant 2 : index
    %c0_51 = arith.constant 0 : index
    %c0_52 = arith.constant 0 : index
    %54 = vector.load %arg5[%c2_50, %c0_51, %c0_52] : memref<4x32x8xbf16, #tpu.memory_space<vmem>>, vector<1x32x8xbf16>
    %55 = vector.shape_cast %54 : vector<1x32x8xbf16> to vector<32x8xbf16>
    %cst_53 = arith.constant dense<0.000000e+00> : vector<8x8xf32>
    %56 = tpu.matmul %2, %55, %cst_53 {dimension_numbers = #tpu.dot_dimension_numbers<[1], [0], [0], [1], [0, 0, 1, 1], [], []>} : vector<8x32xbf16>, vector<32x8xbf16>, vector<8x8xf32> -> vector<8x8xf32>
    %c2_54 = arith.constant 2 : index
    %c0_55 = arith.constant 0 : index
    %c0_56 = arith.constant 0 : index
    %57 = vector.load %arg6[%c2_54, %c0_55, %c0_56] : memref<4x1x8xf32, #tpu.memory_space<vmem>>, vector<1x1x8xf32>
    %58 = vector.shape_cast %57 : vector<1x1x8xf32> to vector<1x8xf32>
    %59 = vector.broadcast %58 : vector<1x8xf32> to vector<8x8xf32>
    %60 = arith.addf %56, %59 : vector<8x8xf32>
    %61 = arith.truncf %53 : vector<8x8xf32> to vector<8x8xbf16>
    %c0_57 = arith.constant 0 : index
    %c2_58 = arith.constant 2 : index
    %c0_59 = arith.constant 0 : index
    %c0_60 = arith.constant 0 : index
    %62 = vector.load %arg7[%c0_57, %c2_58, %c0_59, %c0_60] : memref<1x4x8x8xbf16, #tpu.memory_space<vmem>>, vector<1x1x8x8xbf16>
    %63 = vector.shape_cast %62 : vector<1x1x8x8xbf16> to vector<8x8xbf16>
    %64 = vector.shape_cast %61 : vector<8x8xbf16> to vector<1x1x8x8xbf16>
    tpu.vector_store %arg7[%c0_57, %c2_58, %c0_59, %c0_60], %64 {strides = array<i32>} : memref<1x4x8x8xbf16, #tpu.memory_space<vmem>>, vector<1x1x8x8xbf16>,
    %65 = arith.truncf %60 : vector<8x8xf32> to vector<8x8xbf16>
    %c0_61 = arith.constant 0 : index
    %c2_62 = arith.constant 2 : index
    %c0_63 = arith.constant 0 : index
    %c0_64 = arith.constant 0 : index
    %66 = vector.load %arg8[%c0_61, %c2_62, %c0_63, %c0_64] : memref<1x4x8x8xbf16, #tpu.memory_space<vmem>>, vector<1x1x8x8xbf16>
    %67 = vector.shape_cast %66 : vector<1x1x8x8xbf16> to vector<8x8xbf16>
    %68 = vector.shape_cast %65 : vector<8x8xbf16> to vector<1x1x8x8xbf16>
    tpu.vector_store %arg8[%c0_61, %c2_62, %c0_63, %c0_64], %68 {strides = array<i32>} : memref<1x4x8x8xbf16, #tpu.memory_space<vmem>>, vector<1x1x8x8xbf16>,
    %c3 = arith.constant 3 : index
    %c0_65 = arith.constant 0 : index
    %c0_66 = arith.constant 0 : index
    %69 = vector.load %arg3[%c3, %c0_65, %c0_66] : memref<4x32x8xbf16, #tpu.memory_space<vmem>>, vector<1x32x8xbf16>
    %70 = vector.shape_cast %69 : vector<1x32x8xbf16> to vector<32x8xbf16>
    %cst_67 = arith.constant dense<0.000000e+00> : vector<8x8xf32>
    %71 = tpu.matmul %2, %70, %cst_67 {dimension_numbers = #tpu.dot_dimension_numbers<[1], [0], [0], [1], [0, 0, 1, 1], [], []>} : vector<8x32xbf16>, vector<32x8xbf16>, vector<8x8xf32> -> vector<8x8xf32>
    %c3_68 = arith.constant 3 : index
    %c0_69 = arith.constant 0 : index
    %c0_70 = arith.constant 0 : index
    %72 = vector.load %arg4[%c3_68, %c0_69, %c0_70] : memref<4x1x8xf32, #tpu.memory_space<vmem>>, vector<1x1x8xf32>
    %73 = vector.shape_cast %72 : vector<1x1x8xf32> to vector<1x8xf32>
    %74 = vector.broadcast %73 : vector<1x8xf32> to vector<8x8xf32>
    %75 = arith.addf %71, %74 : vector<8x8xf32>
    %c3_71 = arith.constant 3 : index
    %c0_72 = arith.constant 0 : index
    %c0_73 = arith.constant 0 : index
    %76 = vector.load %arg5[%c3_71, %c0_72, %c0_73] : memref<4x32x8xbf16, #tpu.memory_space<vmem>>, vector<1x32x8xbf16>
    %77 = vector.shape_cast %76 : vector<1x32x8xbf16> to vector<32x8xbf16>
    %cst_74 = arith.constant dense<0.000000e+00> : vector<8x8xf32>
    %78 = tpu.matmul %2, %77, %cst_74 {dimension_numbers = #tpu.dot_dimension_numbers<[1], [0], [0], [1], [0, 0, 1, 1], [], []>} : vector<8x32xbf16>, vector<32x8xbf16>, vector<8x8xf32> -> vector<8x8xf32>
    %c3_75 = arith.constant 3 : index
    %c0_76 = arith.constant 0 : index
    %c0_77 = arith.constant 0 : index
    %79 = vector.load %arg6[%c3_75, %c0_76, %c0_77] : memref<4x1x8xf32, #tpu.memory_space<vmem>>, vector<1x1x8xf32>
    %80 = vector.shape_cast %79 : vector<1x1x8xf32> to vector<1x8xf32>
    %81 = vector.broadcast %80 : vector<1x8xf32> to vector<8x8xf32>
    %82 = arith.addf %78, %81 : vector<8x8xf32>
    %83 = arith.truncf %75 : vector<8x8xf32> to vector<8x8xbf16>
    %c0_78 = arith.constant 0 : index
    %c3_79 = arith.constant 3 : index
    %c0_80 = arith.constant 0 : index
    %c0_81 = arith.constant 0 : index
    %84 = vector.load %arg7[%c0_78, %c3_79, %c0_80, %c0_81] : memref<1x4x8x8xbf16, #tpu.memory_space<vmem>>, vector<1x1x8x8xbf16>
    %85 = vector.shape_cast %84 : vector<1x1x8x8xbf16> to vector<8x8xbf16>
    %86 = vector.shape_cast %83 : vector<8x8xbf16> to vector<1x1x8x8xbf16>
    tpu.vector_store %arg7[%c0_78, %c3_79, %c0_80, %c0_81], %86 {strides = array<i32>} : memref<1x4x8x8xbf16, #tpu.memory_space<vmem>>, vector<1x1x8x8xbf16>,
    %87 = arith.truncf %82 : vector<8x8xf32> to vector<8x8xbf16>
    %c0_82 = arith.constant 0 : index
    %c3_83 = arith.constant 3 : index
    %c0_84 = arith.constant 0 : index
    %c0_85 = arith.constant 0 : index
    %88 = vector.load %arg8[%c0_82, %c3_83, %c0_84, %c0_85] : memref<1x4x8x8xbf16, #tpu.memory_space<vmem>>, vector<1x1x8x8xbf16>
    %89 = vector.shape_cast %88 : vector<1x1x8x8xbf16> to vector<8x8xbf16>
    %90 = vector.shape_cast %87 : vector<8x8xbf16> to vector<1x1x8x8xbf16>
    tpu.vector_store %arg8[%c0_82, %c3_83, %c0_84, %c0_85], %90 {strides = array<i32>} : memref<1x4x8x8xbf16, #tpu.memory_space<vmem>>, vector<1x1x8x8xbf16>,
    return
  }
  func.func @transform_0(%arg0: i32, %arg1: i32) -> (i32, i32, i32) {
    %c0_i32 = arith.constant 0 : i32
    %c0_i32_0 = arith.constant 0 : i32
    return %arg0, %arg1, %c0_i32 : i32, i32, i32
  }
  func.func @transform_1(%arg0: i32, %arg1: i32) -> (i32, i32, i32) {
    %c0_i32 = arith.constant 0 : i32
    %c0_i32_0 = arith.constant 0 : i32
    %c0_i32_1 = arith.constant 0 : i32
    %c0_i32_2 = arith.constant 0 : i32
    return %c0_i32, %c0_i32_0, %c0_i32_1 : i32, i32, i32
  }
  func.func @transform_2(%arg0: i32, %arg1: i32) -> (i32, i32, i32) {
    %c0_i32 = arith.constant 0 : i32
    %c0_i32_0 = arith.constant 0 : i32
    %c0_i32_1 = arith.constant 0 : i32
    %c0_i32_2 = arith.constant 0 : i32
    return %c0_i32, %c0_i32_0, %c0_i32_1 : i32, i32, i32
  }
  func.func @transform_3(%arg0: i32, %arg1: i32) -> (i32, i32, i32) {
    %c0_i32 = arith.constant 0 : i32
    %c0_i32_0 = arith.constant 0 : i32
    %c0_i32_1 = arith.constant 0 : i32
    %c0_i32_2 = arith.constant 0 : i32
    return %c0_i32, %c0_i32_0, %c0_i32_1 : i32, i32, i32
  }
  func.func @transform_4(%arg0: i32, %arg1: i32) -> (i32, i32, i32) {
    %c0_i32 = arith.constant 0 : i32
    %c0_i32_0 = arith.constant 0 : i32
    %c0_i32_1 = arith.constant 0 : i32
    %c0_i32_2 = arith.constant 0 : i32
    return %c0_i32, %c0_i32_0, %c0_i32_1 : i32, i32, i32
  }
  func.func @transform_5(%arg0: i32, %arg1: i32) -> (i32, i32, i32, i32) {
    %c0_i32 = arith.constant 0 : i32
    %c0_i32_0 = arith.constant 0 : i32
    %c0_i32_1 = arith.constant 0 : i32
    return %arg0, %c0_i32, %arg1, %c0_i32_0 : i32, i32, i32, i32
  }
  func.func @transform_6(%arg0: i32, %arg1: i32) -> (i32, i32, i32, i32) {
    %c0_i32 = arith.constant 0 : i32
    %c0_i32_0 = arith.constant 0 : i32
    %c0_i32_1 = arith.constant 0 : i32
    return %arg0, %c0_i32, %arg1, %c0_i32_0 : i32, i32, i32, i32
  }
}

</mosaic_0001>

<bundles_post_ra>
// kernel: tpu_custom_call.1
= control target key start
LH: loop header
LB: loop body
LE: loop exit
PB: predicated region body
PF: predicated region fallthrough
CT: control target
= control target key end

     0   :  { %12 = vsyncpa [#allocation3], 0  ;;  %s1665_s0 = inlined_call_operand.vmem [shape: f32[2,8,32], index: 0, kind: input, shape index: {}]   ;;  %s1666_s1 = inlined_call_operand.vmem [shape: bf16[4,32,8], index: 1, kind: input, shape index: {}]   ;;  %s1667_s2 = inlined_call_operand.vmem [shape: f32[4,1,8], index: 2, kind: input, shape index: {}]   ;;  %s1668_s3 = inlined_call_operand.vmem [shape: bf16[4,32,8], index: 3, kind: input, shape index: {}]   ;;  %s1669_s4 = inlined_call_operand.vmem [shape: f32[4,1,8], index: 4, kind: input, shape index: {}]   ;;  %s1670_s5 = inlined_call_operand.hbm [shape: bf16[2,4,8,8], index: 5, kind: output, shape index: {0}]   ;;  %s1671_s6 = inlined_call_operand.hbm [shape: bf16[2,4,8,8], index: 6, kind: output, shape index: {1}]  }
   0x1   :  { %14 = vsyncpa [#allocation3 + $0x1], 0 }
   0x2   :  { %15 = vsyncpa [#allocation5], 0 }
   0x3   :  { %17 = vsyncpa [#allocation5 + $0x1], 0  ;;  %s1380_s21 = smov 0   ;;  %s1382_s22 = smov 0  }
   0x4   :  { %s1384_s23 = smov 0   ;;  %s1386_s24 = smov 0  }
   0x5   :  { %s1388_s25 = smov 0   ;;  %s1390_s26 = smov 0  }
   0x6 LB: > { %s977_s27 = sadd.s32 4294967295, %s1337_s26   ;;  %s978_s28 = sadd.s32 4294967294, %s1337_s26   ;;  %s1337_s26 = sphi %s1390_s26, %s23_s26   ;;  %s1333_s25 = sphi %s1388_s25, %s1678_s25   ;;  %s1329_s24 = sphi %s1386_s24, %s1677_s24   ;;  %s1325_s23 = sphi %s1384_s23, %s1676_s23   ;;  %s1321_s22 = sphi %s1382_s22, %s1675_s22   ;;  %s1317_s21 = sphi %s1380_s21, %s1674_s21  }
   0x7   : > { %s35_s29 = sadd.s32 1, %s1333_s25  ;;  %s156_s30 = sadd.s32 1, %s1325_s23 }
   0x8   : > { %p37_p0 = scmp.ge.s32.totalorder %s35_s29, 2  ;;  %p166_p1 = scmp.ne.s32.totalorder %s1325_s23, %s1321_s22 }
   0x9   : > { %p167_p2 = scmp.eq.s32.totalorder %s977_s27, 1  ;;  %p172_p3 = scmp.ne.s32.totalorder %s1321_s22, %s1317_s21 }
   0xa   : > { %s1680_s29 = smov (%p37_p0, %s35_s29), 0  ;;  %p173_p5 = scmp.eq.s32.totalorder %s978_s28, 1 }
   0xb   : > { %p1420_p4 = por %p167_p2, %p166_p1  ;;  %s151_s8 = ssub.s32 %s1333_s25, %s1680_s29 }
   0xc   : > { %p981_p6 = scmp.ge.s32.totalorder %s1337_s26, 1  ;;  %p154_p7 = scmp.eq.s32.totalorder %s151_s8, 0 }
   0xd   : > { %p1427_p8 = por %p173_p5, %p172_p3  ;;  %p241_p9 = scmp.lt.s32.totalorder %s1337_s26, 3 }
   0xe   : > { %s1433_s10 = scalar_select %p154_p7, %s1325_s23, %s156_s30  }
   0xf   : > { %p242_p10 = pnand %p981_p6, %p241_p9 }
  0x10   : > { %p278_p11 = scmp.lt.s32.totalorder (!%p242_p10), %s1329_s24, 1  ;;  %s1061_s16 = sshll.u32 (!%p242_p10), %s1329_s24, 8 }
  0x11   : > { %245 = sbr.rel (%p242_p10) target bundleno = 290 (0x122), region = 40  ;;  %s1580_s27 = scalar_lea.hbm (!%p242_p10), %s1670_s5, %s1061_s16 }
  0x12   : > { %s1587_s30 = scalar_lea.hbm (!%p242_p10), %s1671_s6, %s1061_s16  ;;  %s1341_s14 = smov (!%p242_p10), [#allocation2]  }
  0x13   : > { %s1235_s18 = sshll.u32 (!%p242_p10), %s1341_s14, 4  ;;  %s1236_s18 = int_to_ptr.vmem [resolvable:$false] %s1235_s18 }
  0x16   : > { %v1215_v0 = vld [vmem:[%s1666_s1 + $0x8] sm:$0xff]   ;;  %v1339_v1 = vmov 0.0   ;;  %v1217_v3 = vld [vmem:[%s1666_s1] sm:$0xff]   ;;  %vm1340_vm0 = vmmov 0   ;;  %s279_s19 = scalar_select %p278_p11, %s1329_s24, 1  ;;  %v1219_v5 = vld [vmem:[%s1666_s1 + $0x18] sm:$0xff]  }
  0x17   : > { %1087 = vmatprep.subr.bf16.mxu0 %v1339_v1  ;;  %1095 = vmatprep.subr.bf16.mxu1 %v1339_v1  ;;  %v1216_v2 = vld [vmem:[%s1668_s3 + $0x8] sm:$0xff]   ;;  %v1218_v4 = vld [vmem:[%s1668_s3] sm:$0xff]   ;;  %v1220_v6 = vld [vmem:[%s1668_s3 + $0x18] sm:$0xff]   ;;  %vm311_vm1 = vcmask 261120   ;;  %vm419_vm2 = vcmask 60416  }
  0x18   : > { %1088 = vmatpush3.bf16.msra.mxu0 %v1215_v0  ;;  %1091 = vmatprep.mubr.msk.bf16.mxu0 %vm1340_vm0, %v1339_v1  ;;  %s984_s20 = sshll.u32 %s279_s19, 3  ;;  %v1221_v9 = vld [vmem:[%s1666_s1 + $0x10] sm:$0xff]   ;;  %v1223_v11 = vld [vmem:[%s1666_s1 + $0x28] sm:$0xff]   ;;  %v1225_v13 = vld [vmem:[%s1666_s1 + $0x20] sm:$0xff]   ;;  %s1237_s19 = scalar_lea.vmem %s1236_s18, 512 }
  0x19   : > { %1096 = vmatpush3.bf16.msra.mxu1 %v1216_v2  ;;  %1089 = vmatprep.subr.bf16.mxu0 %v1339_v1  ;;  %s284_s11 = scalar_lea.vmem %s1665_s0, %s984_s20  ;;  %v1222_v10 = vld [vmem:[%s1668_s3 + $0x10] sm:$0xff]   ;;  %v1224_v12 = vld [vmem:[%s1668_s3 + $0x28] sm:$0xff]   ;;  %v1226_v14 = vld [vmem:[%s1668_s3 + $0x20] sm:$0xff]   ;;  %s1529_s20 = sand.u32 1, %s1321_s22  }
  0x1a   : > { %1097 = vmatprep.subr.bf16.mxu1 %v1339_v1  ;;  %1099 = vmatprep.mubr.msk.bf16.mxu1 %vm1340_vm0, %v1339_v1  ;;  %v286_v7 = vld [vmem:[%s284_s11] sm:$0xff]  ;;  %v1227_v15 = vld [vmem:[%s1666_s1 + $0x38] sm:$0xff]   ;;  %v1229_v17 = vld [vmem:[%s1666_s1 + $0x30] sm:$0xff]   ;;  %s982_s11 = sshll.u32 %s1529_s20, 4  ;;  %s832_s8 = scalar_lea.sflag [#allocation3], %s1529_s20 }
  0x1b   : > { %v287_v8 = vpack.c.bf16 %v286_v7, %v286_v7  ;;  %v1228_v16 = vld [vmem:[%s1668_s3 + $0x38] sm:$0xff]   ;;  %v1230_v18 = vld [vmem:[%s1668_s3 + $0x30] sm:$0xff]   ;;  %v985_v19 = vld [vmem:[%s1667_s2] ss:$0 sm:$0xff]  ;;  %s1538_s12 = scalar_lea.vmem [#allocation2], %s982_s11  ;;  %s1542_s13 = scalar_lea.vmem [#allocation4], %s982_s11 }
  0x1c   : > { %1090 = vmatpush3.bf16.msra.mxu0 %v1217_v3  ;;  %v989_v20 = vld [vmem:[%s1669_s4] ss:$0 sm:$0xff]  ;;  %v998_v33 = vld [vmem:[%s1667_s2 + $0x1] ss:$0 sm:$0xff]  ;;  %v1018_v47 = vld [vmem:[%s1667_s2 + $0x2] ss:$0 sm:$0xff] }
  0x1d   : > { %1098 = vmatpush3.bf16.msra.mxu1 %v1218_v4  ;;  %1103 = vmatprep.subr.bf16.mxu0 %v1339_v1  ;;  %v1007_v34 = vld [vmem:[%s1669_s4 + $0x1] ss:$0 sm:$0xff]  ;;  %v1027_v48 = vld [vmem:[%s1669_s4 + $0x2] ss:$0 sm:$0xff]  ;;  %v1038_v61 = vld [vmem:[%s1667_s2 + $0x3] ss:$0 sm:$0xff] }
  0x1e   : > { %1111 = vmatprep.subr.bf16.mxu1 %v1339_v1  ;;  %v1047_v62 = vld [vmem:[%s1669_s4 + $0x3] ss:$0 sm:$0xff]  ;;  %s851_s15 = sshll.u32 %s1538_s12, 4  ;;  %s868_s17 = sshll.u32 %s1542_s13, 4  ;;  %s1575_s15 = int_to_ptr.vmem [resolvable:$true] %s851_s15  ;;  %s1582_s17 = int_to_ptr.vmem [resolvable:$true] %s868_s17 }
  0x1f   : > { %1092 = vmatmul.mubr.msk.bf16.vlgmr.msra.gmra.mxu0 %vm311_vm1, %v287_v8  ;;  %s1231_s11 = scalar_lea.vmem %s1575_s15, 256  ;;  %p1238_p1 = scmp.lt.s32.totalorder %s1575_s15, %s1236_s18 }
  0x20   : > { %1100 = vmatmul.mubr.msk.bf16.vlgmr.msra.gmra.mxu1 %vm311_vm1, %v287_v8  ;;  %1104 = vmatpush3.bf16.msra.mxu0 %v1219_v5  ;;  %p1232_p12 = scmp.ne.s32.totalorder %s1575_s15, %s1231_s11  ;;  %p1239_p2 = scmp.lt.s32.totalorder %s1237_s19, %s1231_s11 }
  0x21   : > { %1112 = vmatpush3.bf16.msra.mxu1 %v1220_v6  ;;  %1105 = vmatprep.subr.bf16.mxu0 %v1339_v1 }
  0x22   : > { %1113 = vmatprep.subr.bf16.mxu1 %v1339_v1  ;;  %1107 = vmatprep.mubr.msk.bf16.mxu0 %vm1340_vm0, %v1339_v1  ;;  %p1233_p13 = pnand %p1232_p12, %p1420_p4  ;;  %p1240_p3 = por %p1239_p2, %p1238_p1 }
  0x23   : > { %1115 = vmatprep.mubr.msk.bf16.mxu1 %vm1340_vm0, %v1339_v1 }
  0x24   : > { %1106 = vmatpush3.bf16.msra.mxu0 %v1221_v9  ;;  %p1234_p0 = pneg %p1233_p13 }
  0x25   : > { %1114 = vmatpush3.bf16.msra.mxu1 %v1222_v10  ;;  %1119 = vmatprep.subr.bf16.mxu0 %v1339_v1 }
  0x26   : > { %1127 = vmatprep.subr.bf16.mxu1 %v1339_v1  ;;  %p1241_p5 = pnand %p1240_p3, %p1234_p0 }
  0x27   : > { %1108 = vmatmul.mubr.msk.bf16.vlgmr.msra.gmra.mxu0 %vm311_vm1, %v287_v8 }
  0x28   : > { %1116 = vmatmul.mubr.msk.bf16.vlgmr.msra.gmra.mxu1 %vm311_vm1, %v287_v8  ;;  %1120 = vmatpush3.bf16.msra.mxu0 %v1223_v11 }
  0x29   : > { %1128 = vmatpush3.bf16.msra.mxu1 %v1224_v12  ;;  %1121 = vmatprep.subr.bf16.mxu0 %v1339_v1 }
  0x2a   : > { %1129 = vmatprep.subr.bf16.mxu1 %v1339_v1  ;;  %1123 = vmatprep.mubr.msk.bf16.mxu0 %vm1340_vm0, %v1339_v1 }
  0x2b   : > { %1131 = vmatprep.mubr.msk.bf16.mxu1 %vm1340_vm0, %v1339_v1 }
  0x2c   : > { %1122 = vmatpush3.bf16.msra.mxu0 %v1225_v13 }
  0x2d   : > { %1130 = vmatpush3.bf16.msra.mxu1 %v1226_v14  ;;  %1135 = vmatprep.subr.bf16.mxu0 %v1339_v1 }
  0x2e   : > { %1143 = vmatprep.subr.bf16.mxu1 %v1339_v1 }
  0x2f   : > { %1124 = vmatmul.mubr.msk.bf16.vlgmr.msra.gmra.mxu0 %vm311_vm1, %v287_v8 }
  0x30   : > { %1132 = vmatmul.mubr.msk.bf16.vlgmr.msra.gmra.mxu1 %vm311_vm1, %v287_v8  ;;  %1136 = vmatpush3.bf16.msra.mxu0 %v1227_v15 }
  0x31   : > { %1144 = vmatpush3.bf16.msra.mxu1 %v1228_v16  ;;  %1137 = vmatprep.subr.bf16.mxu0 %v1339_v1 }
  0x32   : > { %1145 = vmatprep.subr.bf16.mxu1 %v1339_v1  ;;  %1139 = vmatprep.mubr.msk.bf16.mxu0 %vm1340_vm0, %v1339_v1 }
  0x33   : > { %1147 = vmatprep.mubr.msk.bf16.mxu1 %vm1340_vm0, %v1339_v1 }
  0x34   : > { %1138 = vmatpush3.bf16.msra.mxu0 %v1229_v17 }
  0x35   : > { %1146 = vmatpush3.bf16.msra.mxu1 %v1230_v18 }
  0x37   : > { %1140 = vmatmul.mubr.msk.bf16.vlgmr.msra.gmra.mxu0 %vm311_vm1, %v287_v8 }
  0x38   : > { %1148 = vmatmul.mubr.msk.bf16.vlgmr.msra.gmra.mxu1 %vm311_vm1, %v287_v8 }
  0xdf   : > { %v349_v21 = vpop.f32.mrf.mxu0 }
  0xe0   : > { %v412_v22 = vpop.f32.mrf.mxu1  ;;  %v350_v23 = vadd.f32 %v985_v19, %v349_v21 }
  0xe1   : > { %v413_v24 = vadd.f32 %v989_v20, %v412_v22  ;;  %v1093_v25 = vpop.f32.mrf.mxu0 }
  0xe2   : > { %v1101_v26 = vpop.f32.mrf.mxu1  ;;  %v418_v27 = vpack.c.bf16 %v350_v23, %v350_v23 }
  0xe3   : > { %v421_v28 = vpack.c.bf16 %v413_v24, %v413_v24  ;;  %v352_v29 = vpop.f32.mrf.mxu0 }
  0xe4   : > { %v415_v30 = vpop.f32.mrf.mxu1  ;;  %420 = vst.msk [vmem:[%s1538_s12] sm:$0xf] %vm419_vm2, %v418_v27 }
  0xe5   : > { %422 = vst.msk [vmem:[%s1542_s13] sm:$0xf] %vm419_vm2, %v421_v28  ;;  %v1094_v31 = vpop.f32.mrf.mxu0 }
  0xe6   : > { %v1102_v32 = vpop.f32.mrf.mxu1 }
  0xe7   : > { %v482_v35 = vpop.f32.mrf.mxu0 }
  0xe8   : > { %v547_v36 = vpop.f32.mrf.mxu1  ;;  %v483_v37 = vadd.f32 %v998_v33, %v482_v35 }
  0xe9   : > { %v548_v38 = vadd.f32 %v1007_v34, %v547_v36  ;;  %v1109_v39 = vpop.f32.mrf.mxu0 }
  0xea   : > { %v1117_v40 = vpop.f32.mrf.mxu1  ;;  %v553_v41 = vpack.c.bf16 %v483_v37, %v483_v37 }
  0xeb   : > { %v556_v42 = vpack.c.bf16 %v548_v38, %v548_v38  ;;  %v485_v43 = vpop.f32.mrf.mxu0 }
  0xec   : > { %v550_v44 = vpop.f32.mrf.mxu1  ;;  %1011 = vst.msk [vmem:[%s1538_s12 + $0x4] sm:$0xf] %vm419_vm2, %v553_v41 }
  0xed   : > { %1012 = vst.msk [vmem:[%s1542_s13 + $0x4] sm:$0xf] %vm419_vm2, %v556_v42  ;;  %v1110_v45 = vpop.f32.mrf.mxu0 }
  0xee   : > { %v1118_v46 = vpop.f32.mrf.mxu1 }
  0xef   : > { %v618_v49 = vpop.f32.mrf.mxu0 }
  0xf0   : > { %v683_v50 = vpop.f32.mrf.mxu1  ;;  %v619_v51 = vadd.f32 %v1018_v47, %v618_v49 }
  0xf1   : > { %v684_v52 = vadd.f32 %v1027_v48, %v683_v50  ;;  %v1125_v53 = vpop.f32.mrf.mxu0 }
  0xf2   : > { %v1133_v54 = vpop.f32.mrf.mxu1  ;;  %v689_v55 = vpack.c.bf16 %v619_v51, %v619_v51 }
  0xf3   : > { %v692_v56 = vpack.c.bf16 %v684_v52, %v684_v52  ;;  %v621_v57 = vpop.f32.mrf.mxu0 }
  0xf4   : > { %v686_v58 = vpop.f32.mrf.mxu1  ;;  %1031 = vst.msk [vmem:[%s1538_s12 + $0x8] sm:$0xf] %vm419_vm2, %v689_v55 }
  0xf5   : > { %1032 = vst.msk [vmem:[%s1542_s13 + $0x8] sm:$0xf] %vm419_vm2, %v692_v56  ;;  %v1126_v59 = vpop.f32.mrf.mxu0 }
  0xf6   : > { %v1134_v60 = vpop.f32.mrf.mxu1 }
  0xf7   : > { %v754_v63 = vpop.f32.mrf.mxu0 }
  0xf8   : > { %v819_v0 = vpop.f32.mrf.mxu1  ;;  %v755_v1 = vadd.f32 %v1038_v61, %v754_v63 }
  0xf9   : > { %v820_v2 = vadd.f32 %v1047_v62, %v819_v0  ;;  %v1141_v3 = vpop.f32.mrf.mxu0 }
  0xfa   : > { %v1149_v4 = vpop.f32.mrf.mxu1  ;;  %v825_v5 = vpack.c.bf16 %v755_v1, %v755_v1 }
  0xfb   : > { %v828_v6 = vpack.c.bf16 %v820_v2, %v820_v2  ;;  %v757_v7 = vpop.f32.mrf.mxu0 }
  0xfc   : > { %v822_v8 = vpop.f32.mrf.mxu1  ;;  %1051 = vst.msk [vmem:[%s1538_s12 + $0xc] sm:$0xf] %vm419_vm2, %v825_v5 }
  0xfd   : > { %1052 = vst.msk [vmem:[%s1542_s13 + $0xc] sm:$0xf] %vm419_vm2, %v828_v6  ;;  %v1142_v9 = vpop.f32.mrf.mxu0 }
  0xfe   : > { %v1150_v10 = vpop.f32.mrf.mxu1 }
  0xff   : > { %1244 = shalt.err (!%p1241_p5)
}
 0x100   : > { %s1245_s12 = scalar_lea.hbm %s1580_s27, 256  ;;  %s1249_s24 = scalar_lea.hbm %s1670_s5, 512 }
 0x101   : > { %p1246_p6 = scmp.ne.s32.totalorder %s1580_s27, %s1245_s12  ;;  %p1250_p10 = scmp.lt.s32.totalorder %s1580_s27, %s1670_s5 }
 0x102   : > { %p1251_p11 = scmp.lt.s32.totalorder %s1249_s24, %s1245_s12 }
 0x103   : > { %p1247_p7 = pnand %p1246_p6, %p1420_p4 }
 0x104   : > { %p1252_p12 = por %p1251_p11, %p1250_p10 }
 0x105   : > { %p1248_p9 = pneg %p1247_p7 }
 0x107   : > { %p1253_p13 = pnand %p1252_p12, %p1248_p9 }
 0x109   : > { %1256 = shalt.err (!%p1253_p13)
}
 0x10a   : > { %s1342_s11 = smov 64   ;;  %s1343_s18 = smov 4  }
 0x10b   : > { %1151 = dma.vmem_to_hbm [thread:$0]  (%p1420_p4), %s1575_s15, 256, %s1580_s27, %s832_s8, %s1342_s11, %s1342_s11, %s1343_s18  }
 0x10c   : > { %s837_s19 = scalar_lea.sflag [#allocation5], %s1529_s20  ;;  %s1257_s12 = scalar_lea.vmem %s1582_s17, 256 }
 0x10d   : > { %p1258_p0 = scmp.ne.s32.totalorder %s1582_s17, %s1257_s12  ;;  %s1344_s13 = smov [#allocation4]  }
 0x10e   : > { %s1261_s16 = sshll.u32 %s1344_s13, 4  ;;  %s1262_s16 = int_to_ptr.vmem [resolvable:$false] %s1261_s16 }
 0x10f   : > { %p1259_p1 = pnand %p1258_p0, %p1420_p4  ;;  %s1263_s24 = scalar_lea.vmem %s1262_s16, 512 }
 0x110   : > { %p1264_p3 = scmp.lt.s32.totalorder %s1582_s17, %s1262_s16  ;;  %p1265_p5 = scmp.lt.s32.totalorder %s1263_s24, %s1257_s12 }
 0x111   : > { %p1260_p2 = pneg %p1259_p1 }
 0x112   : > { %p1266_p6 = por %p1265_p5, %p1264_p3 }
 0x114   : > { %p1267_p7 = pnand %p1266_p6, %p1260_p2 }
 0x116   : > { %1270 = shalt.err (!%p1267_p7)
}
 0x117   : > { %s1271_s15 = scalar_lea.hbm %s1587_s30, 256  ;;  %s1275_s8 = scalar_lea.hbm %s1671_s6, 512 }
 0x118   : > { %p1272_p9 = scmp.ne.s32.totalorder %s1587_s30, %s1271_s15  ;;  %p1276_p12 = scmp.lt.s32.totalorder %s1587_s30, %s1671_s6 }
 0x119   : > { %p1277_p13 = scmp.lt.s32.totalorder %s1275_s8, %s1271_s15 }
 0x11a   : > { %p1273_p10 = pnand %p1272_p9, %p1420_p4 }
 0x11b   : > { %p1278_p0 = por %p1277_p13, %p1276_p12 }
 0x11c   : > { %p1274_p11 = pneg %p1273_p10 }
 0x11e   : > { %p1279_p1 = pnand %p1278_p0, %p1274_p11 }
 0x120   : > { %1282 = shalt.err (!%p1279_p1)
}
 0x121   : > { %1152 = dma.vmem_to_hbm [thread:$0]  (%p1420_p4), %s1582_s17, 256, %s1587_s30, %s837_s19, %s1342_s11, %s1342_s11, %s1343_s18  }
 0x122 PF: > { %p1162_p2 = scmp.ge.s32.totalorder %s1337_s26, 2  ;;  %s883_s12 = sand.u32 1, %s1317_s21  }
 0x123   : > { %s884_s13 = scalar_lea.sflag [#allocation3], %s883_s12 }
 0x124   : > { %p1156_p3 = pnand %p1162_p2, %p1427_p8 }
 0x126   : > { %p1157_p5 = pneg %p1156_p3 }
 0x128   : > { %1308 = dma.done.wait (%p1157_p5), %s884_s13, 256  }
 0x129   : > { %1310 = vsyncadd (%p1157_p5), %s884_s13, 4294967040  ;;  %s893_s16 = scalar_lea.sflag [#allocation5], %s883_s12 }
 0x12a   : > { %1312 = dma.done.wait (%p1157_p5), %s893_s16, 256  }
 0x12b   : > { %1314 = vsyncadd (%p1157_p5), %s893_s16, 4294967040  ;;  %s23_s26 = sadd.s32 1, %s1337_s26   ;;  %s1674_s21 = smov %s1321_s22 }
 0x12c   : > { %p20_p6 = scmp.ge.s32.totalorder %s23_s26, 4   ;;  %s1675_s22 = smov %s1325_s23 }
 0x12d   : > { %s1676_s23 = smov %s1433_s10  ;;  %s1677_s24 = smov %s1333_s25 }
 0x12e   : > { %s1678_s25 = smov %s1680_s29  ;;  %22 = sbr.rel (!%p20_p6) target bundleno = 6 (0x6), region = 110 }
 0x133   :  { %898 = vsyncpa [#allocation3], 1 }
 0x134   :  { %900 = vsyncpa [#allocation3 + $0x1], 1 }
 0x135   :  { %901 = vsyncpa [#allocation5], 1 }
 0x136   :  { %903 = vsyncpa [#allocation5 + $0x1], 1 }

</bundles_post_ra>
